<compile_context>
chip_gen: v7x
topology: tpu7x:2x2x1
jax: 0.10.0
libtpu: 0.0.40
codegen_flags: <defaults>
</compile_context>

<pallas_src>
import functools

import jax
import jax.numpy as jnp
from jax.experimental import pallas as pl
from jax.experimental.pallas import tpu as pltpu


def keypoints_emb_kernel(x_ref, wfc_ref, bfc_ref, wconv_ref, bconv_ref, out_ref):
    """One batch tile per grid step.

    x_ref:     (B_tile, T, Fin)   bf16 frame features
    wfc_ref:   (Fin, D0)          bf16 fc weight (pre-transposed)
    bfc_ref:   (1, D0)            f32 fc bias
    wconv_ref: (K*D0, E)          bf16 conv weight, [k*D0 + d, e] = w[e, d, k]
    bconv_ref: (1, E)             f32 conv bias
    out_ref:   (B_tile, T, E)     f32; rows t >= T-K+1 of each batch are junk
    """
    b_tile, t, fin = x_ref.shape
    d0 = wfc_ref.shape[1]
    e = out_ref.shape[-1]
    k_size = wconv_ref.shape[0] // d0
    rows = b_tile * t

    # --- FC + bias + ReLU: one MXU matmul over all B_tile*T frames ---
    x2d = x_ref[...].reshape(rows, fin)
    h = jnp.dot(x2d, wfc_ref[...], preferred_element_type=jnp.float32)
    h = jnp.maximum(h + bfc_ref[...], 0.0)           # (rows, D0), f32
    h = h.astype(wconv_ref.dtype)                    # bf16 operand for the MXU

    # --- Conv1d as K full-height matmuls + XLU row rolls (no unaligned slices)
    acc = jnp.zeros((rows, e), jnp.float32)
    for k in range(k_size):                          # K is small; static unroll
        y = jnp.dot(h, wconv_ref[k * d0:(k + 1) * d0, :],
                    preferred_element_type=jnp.float32)
        if k:
            # acc[i] needs y[i + k] == jnp.roll(y, -k)[i] == roll by rows - k
            y = pltpu.roll(y, rows - k, axis=0)
        acc = acc + y
    acc = acc + bconv_ref[...]                       # single f32 epilogue add

    out_ref[...] = acc.reshape(b_tile, t, e).astype(out_ref.dtype)


def _choose_b_tile(batch, t, target_rows=512):
    """Batch tile big enough to fill the MXU M dim; >=2 grid steps if possible."""
    bt = max(1, min(batch, target_rows // max(t, 1)))
    # v7x has 2 TensorCores: keep >= 2 parallel grid steps when batch allows.
    while bt > 1 and -(-batch // bt) < 2:
        bt //= 2
    return max(bt, 1)


@functools.partial(jax.jit, static_argnames=("kernel_size", "b_tile"))
def keypoints_embedding(x, wfc, bfc, wconv, bconv, *, kernel_size, b_tile=None):
    """x: (B, T, keys_amount*3) f32.  Returns (B, emb_size, T - kernel_size + 1)."""
    B, T, Fin = x.shape
    E, D0, K = wconv.shape
    assert K == kernel_size
    T_out = T - K + 1

    if b_tile is None:
        b_tile = _choose_b_tile(B, T)
    B_pad = -(-B // b_tile) * b_tile
    if B_pad != B:
        x = jnp.pad(x, ((0, B_pad - B), (0, 0), (0, 0)))

    # bf16 operands for the MXU; biases / epilogue stay f32.
    mxu_dtype = jnp.bfloat16
    x_mxu = x.astype(mxu_dtype)
    wfc_t = wfc.T.astype(mxu_dtype)                                   # (Fin, D0)
    bfc_2d = bfc.reshape(1, D0).astype(jnp.float32)                   # (1, D0)
    wconv_2d = jnp.transpose(wconv, (2, 1, 0)).reshape(K * D0, E).astype(mxu_dtype)
    bconv_2d = bconv.reshape(1, E).astype(jnp.float32)                # (1, E)

    grid = (B_pad // b_tile,)

    flops = 2 * B_pad * T * Fin * D0 + 2 * B_pad * T * K * D0 * E
    bytes_accessed = (B_pad * T * Fin * 2 + B_pad * T * E * 4
                      + Fin * D0 * 2 + K * D0 * E * 2 + (D0 + E) * 4)
    cost = pl.CostEstimate(flops=flops, transcendentals=0,
                           bytes_accessed=bytes_accessed)

    # Per-tile VMEM footprint is tiny (~KBs), well inside the 32 MiB default
    # scoped limit even on v7x's 64 MiB VMEM, so vmem_limit_bytes is left alone.
    out_full = pl.pallas_call(
        keypoints_emb_kernel,
        out_shape=jax.ShapeDtypeStruct((B_pad, T, E), jnp.float32),
        grid_spec=pltpu.PrefetchScalarGridSpec(
            num_scalar_prefetch=0,
            grid=grid,
            in_specs=[
                pl.BlockSpec((b_tile, T, Fin), lambda g: (g, 0, 0)),
                pl.BlockSpec((Fin, D0), lambda g: (0, 0)),
                pl.BlockSpec((1, D0), lambda g: (0, 0)),
                pl.BlockSpec((K * D0, E), lambda g: (0, 0)),
                pl.BlockSpec((1, E), lambda g: (0, 0)),
            ],
            out_specs=pl.BlockSpec((b_tile, T, E), lambda g: (g, 0, 0)),
        ),
        compiler_params=pltpu.CompilerParams(
            dimension_semantics=("parallel",)),
        cost_estimate=cost,
    )(x_mxu, wfc_t, bfc_2d, wconv_2d, bconv_2d)

    # Drop batch padding + the K-1 junk frames per batch; emit PyTorch NCL.
    return jnp.transpose(out_full[:B, :T_out, :], (0, 2, 1))


def reference(x, wfc, bfc, wconv, bconv, *, mxu_dtype=None):
    """Pure-JAX forward matching the PyTorch module.

    mxu_dtype=None     -> exact f32 forward (PyTorch semantics)
    mxu_dtype=bfloat16 -> mirrors the kernel's matmul-operand cast policy
    """
    cast = (lambda a: a) if mxu_dtype is None else (lambda a: a.astype(mxu_dtype))
    E, D0, K = wconv.shape
    h = jnp.einsum("btf,df->btd", cast(x), cast(wfc),
                   preferred_element_type=jnp.float32)
    h = jnp.maximum(h + bfc, 0.0)
    h = cast(h)
    T_out = x.shape[1] - K + 1
    acc = jnp.zeros((x.shape[0], T_out, E), jnp.float32) + bconv
    for k in range(K):
        acc = acc + jnp.einsum("btd,ed->bte", h[:, k:k + T_out, :],
                               cast(wconv[:, :, k]),
                               preferred_element_type=jnp.float32)
    return jnp.transpose(acc, (0, 2, 1))  # (B, E, T_out)


if __name__ == "__main__":
    # Small shapes consistent with the module.
    keys_amount = 11            # -> in_features = 33
    kernel_size = 5
    emb_size = 16
    keys_initial_emb_size = 32
    B, T = 2, 16
    Fin = keys_amount * 3

    key = jax.random.PRNGKey(0)
    k_frames, k_wfc, k_bfc, k_wc, k_bc = jax.random.split(key, 5)

    # "List of lists of (keys_amount, 3) frames" built as a dense tensor;
    # torch.flatten(frame) == row-major reshape of the last two dims.
    frames = jax.random.normal(k_frames, (B, T, keys_amount, 3), jnp.float32)
    x = frames.reshape(B, T, Fin)

    # Deterministic parameter init (shapes from the module's __init__).
    wfc = jax.random.normal(k_wfc, (keys_initial_emb_size, Fin), jnp.float32) * 0.1
    bfc = jax.random.normal(k_bfc, (keys_initial_emb_size,), jnp.float32) * 0.1
    wconv = jax.random.normal(
        k_wc, (emb_size, keys_initial_emb_size, kernel_size), jnp.float32) * 0.1
    bconv = jax.random.normal(k_bc, (emb_size,), jnp.float32) * 0.1

    out = keypoints_embedding(x, wfc, bfc, wconv, bconv, kernel_size=kernel_size)
    out = jax.block_until_ready(out)
    assert out.shape == (B, emb_size, T - kernel_size + 1), out.shape

    # Structural check: reference with the same bf16-MXU operand policy.
    ref_mxu = reference(x, wfc, bfc, wconv, bconv, mxu_dtype=jnp.bfloat16)
    err_mxu = float(jnp.max(jnp.abs(out - ref_mxu)))
    assert jnp.allclose(out, ref_mxu, atol=2e-3, rtol=2e-3), err_mxu

    # Loose check vs the exact f32 PyTorch-equivalent forward (bf16 rounding).
    ref_f32 = reference(x, wfc, bfc, wconv, bconv, mxu_dtype=None)
    err_f32 = float(jnp.max(jnp.abs(out - ref_f32)))
    assert jnp.allclose(out, ref_f32, atol=5e-2, rtol=5e-2), err_f32

    print("KERNEL_OK")
</pallas_src>

<mosaic_0001>
module attributes {stable_mosaic.version = 11 : i64} {
  func.func @keypoints_emb_kernel(%arg0: i32, %arg1: memref<1x16x33xbf16, #tpu.memory_space<vmem>>, %arg2: memref<33x32xbf16, #tpu.memory_space<vmem>>, %arg3: memref<1x32xf32, #tpu.memory_space<vmem>>, %arg4: memref<160x16xbf16, #tpu.memory_space<vmem>>, %arg5: memref<1x16xf32, #tpu.memory_space<vmem>>, %arg6: memref<1x16x16xf32, #tpu.memory_space<vmem>>) attributes {dimension_semantics = [#tpu.dimension_semantics<parallel>], iteration_bounds = array<i64: 2>, scalar_prefetch = 0 : i64, scratch_operands = 0 : i64, tpu.core_type = #tpu.core_type<tc>, window_params = [{transform_indices = @transform_0, window_bounds = array<i64: 1, 16, 33>}, {pipeline_mode = #tpu.pipeline_mode<synchronous>, transform_indices = @transform_1, window_bounds = array<i64: 33, 32>}, {pipeline_mode = #tpu.pipeline_mode<synchronous>, transform_indices = @transform_2, window_bounds = array<i64: 1, 32>}, {pipeline_mode = #tpu.pipeline_mode<synchronous>, transform_indices = @transform_3, window_bounds = array<i64: 160, 16>}, {pipeline_mode = #tpu.pipeline_mode<synchronous>, transform_indices = @transform_4, window_bounds = array<i64: 1, 16>}, {transform_indices = @transform_5, window_bounds = array<i64: 1, 16, 16>}]} {
    %c0 = arith.constant 0 : index
    %c0_0 = arith.constant 0 : index
    %c0_1 = arith.constant 0 : index
    %0 = vector.load %arg1[%c0, %c0_0, %c0_1] : memref<1x16x33xbf16, #tpu.memory_space<vmem>>, vector<1x16x33xbf16>
    %1 = vector.shape_cast %0 : vector<1x16x33xbf16> to vector<16x33xbf16>
    %c0_2 = arith.constant 0 : index
    %c0_3 = arith.constant 0 : index
    %2 = vector.load %arg2[%c0_2, %c0_3] : memref<33x32xbf16, #tpu.memory_space<vmem>>, vector<33x32xbf16>
    %cst = arith.constant dense<0.000000e+00> : vector<16x32xf32>
    %3 = tpu.matmul %1, %2, %cst {dimension_numbers = #tpu.dot_dimension_numbers<[1], [0], [0], [1], [0, 0, 1, 1], [], []>} : vector<16x33xbf16>, vector<33x32xbf16>, vector<16x32xf32> -> vector<16x32xf32>
    %c0_4 = arith.constant 0 : index
    %c0_5 = arith.constant 0 : index
    %4 = vector.load %arg3[%c0_4, %c0_5] : memref<1x32xf32, #tpu.memory_space<vmem>>, vector<1x32xf32>
    %5 = vector.broadcast %4 : vector<1x32xf32> to vector<16x32xf32>
    %6 = arith.addf %3, %5 : vector<16x32xf32>
    %cst_6 = arith.constant 0.000000e+00 : f32
    %7 = vector.broadcast %cst_6 : f32 to vector<16x32xf32>
    %8 = arith.maximumf %6, %7 : vector<16x32xf32>
    %9 = arith.truncf %8 : vector<16x32xf32> to vector<16x32xbf16>
    %cst_7 = arith.constant 0.000000e+00 : f32
    %10 = vector.broadcast %cst_7 : f32 to vector<16x16xf32>
    %c0_8 = arith.constant 0 : index
    %c0_9 = arith.constant 0 : index
    %11 = vector.load %arg4[%c0_8, %c0_9] : memref<160x16xbf16, #tpu.memory_space<vmem>>, vector<32x16xbf16>
    %cst_10 = arith.constant dense<0.000000e+00> : vector<16x16xf32>
    %12 = tpu.matmul %9, %11, %cst_10 {dimension_numbers = #tpu.dot_dimension_numbers<[1], [0], [0], [1], [0, 0, 1, 1], [], []>} : vector<16x32xbf16>, vector<32x16xbf16>, vector<16x16xf32> -> vector<16x16xf32>
    %13 = arith.addf %10, %12 : vector<16x16xf32>
    %c32 = arith.constant 32 : index
    %c0_11 = arith.constant 0 : index
    %14 = vector.load %arg4[%c32, %c0_11] : memref<160x16xbf16, #tpu.memory_space<vmem>>, vector<32x16xbf16>
    %cst_12 = arith.constant dense<0.000000e+00> : vector<16x16xf32>
    %15 = tpu.matmul %9, %14, %cst_12 {dimension_numbers = #tpu.dot_dimension_numbers<[1], [0], [0], [1], [0, 0, 1, 1], [], []>} : vector<16x32xbf16>, vector<32x16xbf16>, vector<16x16xf32> -> vector<16x16xf32>
    %c15_i32 = arith.constant 15 : i32
    %16 = tpu.dynamic_rotate %15 by %c15_i32 dim 0 : vector<16x16xf32>, i32 -> vector<16x16xf32>
    %17 = arith.addf %13, %16 : vector<16x16xf32>
    %c64 = arith.constant 64 : index
    %c0_13 = arith.constant 0 : index
    %18 = vector.load %arg4[%c64, %c0_13] : memref<160x16xbf16, #tpu.memory_space<vmem>>, vector<32x16xbf16>
    %cst_14 = arith.constant dense<0.000000e+00> : vector<16x16xf32>
    %19 = tpu.matmul %9, %18, %cst_14 {dimension_numbers = #tpu.dot_dimension_numbers<[1], [0], [0], [1], [0, 0, 1, 1], [], []>} : vector<16x32xbf16>, vector<32x16xbf16>, vector<16x16xf32> -> vector<16x16xf32>
    %c14_i32 = arith.constant 14 : i32
    %20 = tpu.dynamic_rotate %19 by %c14_i32 dim 0 : vector<16x16xf32>, i32 -> vector<16x16xf32>
    %21 = arith.addf %17, %20 : vector<16x16xf32>
    %c96 = arith.constant 96 : index
    %c0_15 = arith.constant 0 : index
    %22 = vector.load %arg4[%c96, %c0_15] : memref<160x16xbf16, #tpu.memory_space<vmem>>, vector<32x16xbf16>
    %cst_16 = arith.constant dense<0.000000e+00> : vector<16x16xf32>
    %23 = tpu.matmul %9, %22, %cst_16 {dimension_numbers = #tpu.dot_dimension_numbers<[1], [0], [0], [1], [0, 0, 1, 1], [], []>} : vector<16x32xbf16>, vector<32x16xbf16>, vector<16x16xf32> -> vector<16x16xf32>
    %c13_i32 = arith.constant 13 : i32
    %24 = tpu.dynamic_rotate %23 by %c13_i32 dim 0 : vector<16x16xf32>, i32 -> vector<16x16xf32>
    %25 = arith.addf %21, %24 : vector<16x16xf32>
    %c128 = arith.constant 128 : index
    %c0_17 = arith.constant 0 : index
    %26 = vector.load %arg4[%c128, %c0_17] : memref<160x16xbf16, #tpu.memory_space<vmem>>, vector<32x16xbf16>
    %cst_18 = arith.constant dense<0.000000e+00> : vector<16x16xf32>
    %27 = tpu.matmul %9, %26, %cst_18 {dimension_numbers = #tpu.dot_dimension_numbers<[1], [0], [0], [1], [0, 0, 1, 1], [], []>} : vector<16x32xbf16>, vector<32x16xbf16>, vector<16x16xf32> -> vector<16x16xf32>
    %c12_i32 = arith.constant 12 : i32
    %28 = tpu.dynamic_rotate %27 by %c12_i32 dim 0 : vector<16x16xf32>, i32 -> vector<16x16xf32>
    %29 = arith.addf %25, %28 : vector<16x16xf32>
    %c0_19 = arith.constant 0 : index
    %c0_20 = arith.constant 0 : index
    %30 = vector.load %arg5[%c0_19, %c0_20] : memref<1x16xf32, #tpu.memory_space<vmem>>, vector<1x16xf32>
    %31 = vector.broadcast %30 : vector<1x16xf32> to vector<16x16xf32>
    %32 = arith.addf %29, %31 : vector<16x16xf32>
    %33 = vector.shape_cast %32 : vector<16x16xf32> to vector<1x16x16xf32>
    %c0_21 = arith.constant 0 : index
    %c0_22 = arith.constant 0 : index
    %c0_23 = arith.constant 0 : index
    %34 = vector.load %arg6[%c0_21, %c0_22, %c0_23] : memref<1x16x16xf32, #tpu.memory_space<vmem>>, vector<1x16x16xf32>
    tpu.vector_store %arg6[%c0_21, %c0_22, %c0_23], %33 {strides = array<i32>} : memref<1x16x16xf32, #tpu.memory_space<vmem>>, vector<1x16x16xf32>,
    return
  }
  func.func @transform_0(%arg0: i32) -> (i32, i32, i32) {
    %c0_i32 = arith.constant 0 : i32
    %c0_i32_0 = arith.constant 0 : i32
    %c0_i32_1 = arith.constant 0 : i32
    return %arg0, %c0_i32, %c0_i32_0 : i32, i32, i32
  }
  func.func @transform_1(%arg0: i32) -> (i32, i32) {
    %c0_i32 = arith.constant 0 : i32
    %c0_i32_0 = arith.constant 0 : i32
    %c0_i32_1 = arith.constant 0 : i32
    return %c0_i32, %c0_i32_0 : i32, i32
  }
  func.func @transform_2(%arg0: i32) -> (i32, i32) {
    %c0_i32 = arith.constant 0 : i32
    %c0_i32_0 = arith.constant 0 : i32
    %c0_i32_1 = arith.constant 0 : i32
    return %c0_i32, %c0_i32_0 : i32, i32
  }
  func.func @transform_3(%arg0: i32) -> (i32, i32) {
    %c0_i32 = arith.constant 0 : i32
    %c0_i32_0 = arith.constant 0 : i32
    %c0_i32_1 = arith.constant 0 : i32
    return %c0_i32, %c0_i32_0 : i32, i32
  }
  func.func @transform_4(%arg0: i32) -> (i32, i32) {
    %c0_i32 = arith.constant 0 : i32
    %c0_i32_0 = arith.constant 0 : i32
    %c0_i32_1 = arith.constant 0 : i32
    return %c0_i32, %c0_i32_0 : i32, i32
  }
  func.func @transform_5(%arg0: i32) -> (i32, i32, i32) {
    %c0_i32 = arith.constant 0 : i32
    %c0_i32_0 = arith.constant 0 : i32
    %c0_i32_1 = arith.constant 0 : i32
    return %arg0, %c0_i32, %c0_i32_0 : i32, i32, i32
  }
}

</mosaic_0001>

<bundles_post_ra>
// kernel: keypoints_embedding.1
= control target key start
LH: loop header
LB: loop body
LE: loop exit
PB: predicated region body
PF: predicated region fallthrough
CT: control target
= control target key end

     0   :  { %s868_s18 = smov 0   ;;  %s964_s0 = inlined_call_operand.vmem [shape: bf16[2,16,33], index: 0, kind: input, shape index: {}]   ;;  %s965_s1 = inlined_call_operand.vmem [shape: bf16[33,32], index: 1, kind: input, shape index: {}]   ;;  %s966_s2 = inlined_call_operand.vmem [shape: f32[1,32], index: 2, kind: input, shape index: {}]   ;;  %s967_s3 = inlined_call_operand.vmem [shape: bf16[160,16], index: 3, kind: input, shape index: {}]   ;;  %s968_s4 = inlined_call_operand.vmem [shape: f32[1,16], index: 4, kind: input, shape index: {}]   ;;  %s969_s5 = inlined_call_operand.vmem [shape: f32[2,16,16], index: 5, kind: output, shape index: {}]  }
   0x1 LB: > { %s698_s19 = sadd.s32 4294967295, %s833_s18   ;;  %p702_p0 = scmp.ge.s32.totalorder %s833_s18, 1  ;;  %s833_s18 = sphi %s868_s18, %s15_s18  }
   0x2   : > { %p187_p1 = scmp.lt.s32.totalorder %s833_s18, 3 }
   0x4   : > { %p188_p2 = pnand %p702_p0, %p187_p1 }
   0x5   : > { %v813_v0 = vld [vmem:[%s965_s1] sm:$0xff] (!%p188_p2)   ;;  %v835_v1 = vmov (!%p188_p2), 0.0   ;;  %v814_v2 = vld [vmem:[%s965_s1 + $0x8] sm:$0xff] (!%p188_p2)   ;;  %vm264_vm0 = vcmask (!%p188_p2), 1040384   ;;  %v836_v4 = vmov (!%p188_p2), 0   ;;  %p215_p3 = scmp.lt.s32.totalorder (!%p188_p2), %s698_s19, 1  ;;  %v381_v28 = vlaneseq (!%p188_p2) }
   0x6   : > { %191 = sbr.rel (%p188_p2) target bundleno = 478 (0x1de), region = 40  ;;  %752 = vmatprep.subr.bf16.mxu0 (!%p188_p2), %v835_v1  ;;  %762 = vmatprep.subr.bf16.mxu1 (!%p188_p2), %v835_v1  ;;  %v815_v3 = vld [vmem:[%s965_s1 + $0x10] ss:$0 sps:$4 sm:$0x11] (!%p188_p2)   ;;  %v266_v5 = vsel (!%p188_p2), %vm264_vm0, 65535, %v836_v4  ;;  %vm837_vm1 = vmmov (!%p188_p2), 0  }
   0x7   : > { %753 = vmatpush3.bf16.msra.mxu0 (!%p188_p2), %v813_v0  ;;  %758 = vmatprep.mubr.msk.bf16.mxu0 (!%p188_p2), %vm837_vm1, %v835_v1  ;;  %v268_v6 = vand.u32 (!%p188_p2), %v815_v3, %v266_v5  ;;  %vm260_vm2 = vcmask (!%p188_p2), 269312   ;;  %v817_v8 = vld [vmem:[%s967_s3 + $0x10] sm:$0xff] (!%p188_p2)   ;;  %v818_v9 = vld [vmem:[%s967_s3 + $0x20] sm:$0xff] (!%p188_p2)   ;;  %v819_v10 = vld [vmem:[%s967_s3 + $0x18] sm:$0xff] (!%p188_p2)   ;;  %vm334_vm3 = vcmask (!%p188_p2), 261120   ;;  %v382_v29 = vshrl.u32 (!%p188_p2), %v381_v28, 7 }
   0x8   : > { %754 = vmatprep.subr.bf16.mxu0 (!%p188_p2), %v835_v1  ;;  %766 = vmatprep.mubr.msk.bf16.mxu1 (!%p188_p2), %vm837_vm1, %v835_v1  ;;  %v820_v11 = vld [vmem:[%s967_s3 + $0x28] sm:$0xff] (!%p188_p2)   ;;  %v707_v12 = vld [vmem:[%s966_s2] ss:$0 sm:$0xff] (!%p188_p2)  ;;  %v825_v26 = vld [vmem:[%s967_s3 + $0x30] sm:$0xff] (!%p188_p2)   ;;  %vm640_vm8 = vcmask (!%p188_p2), 130048  }
   0x9   : > { %763 = vmatpush3.bf16.msra.mxu1 (!%p188_p2), %v817_v8  ;;  %v821_v21 = vld [vmem:[%s967_s3] sm:$0xff] (!%p188_p2)   ;;  %v823_v24 = vld [vmem:[%s967_s3 + $0x8] sm:$0xff] (!%p188_p2)   ;;  %v826_v27 = vld [vmem:[%s967_s3 + $0x38] sm:$0xff] (!%p188_p2)   ;;  %vm383_vm4 = vcmp.lt.s32.totalorder (!%p188_p2), %v382_v29, 7  ;;  %vm498_vm5 = vcmp.lt.s32.totalorder (!%p188_p2), %v382_v29, 6  ;;  %vm626_vm6 = vcmp.lt.s32.totalorder (!%p188_p2), %v382_v29, 4 }
   0xa   : > { %764 = vmatprep.subr.bf16.mxu1 (!%p188_p2), %v835_v1  ;;  %v822_v22 = vld [vmem:[%s967_s3 + $0x40] sm:$0xff] (!%p188_p2)   ;;  %v824_v25 = vld [vmem:[%s967_s3 + $0x48] sm:$0xff] (!%p188_p2)   ;;  %vm562_vm7 = vcmp.lt.s32.totalorder (!%p188_p2), %v382_v29, 5 }
   0xb   : > { %755 = vmatpush3.bf16.msra.mxu0 (!%p188_p2), %v814_v2  ;;  %v728_v8 = vld [vmem:[%s968_s4] ss:$0 sm:$0xff] (!%p188_p2) }
   0xc   : > { %756 = vmatprep.subr.bf16.mxu0 (!%p188_p2), %v835_v1 }
   0xd   : > { %s971_s19 = smov (!%p215_p3, %s698_s19), 1  ;;  %765 = vmatpush3.bf16.msra.mxu1 %v819_v10 }
   0xe   : > { %s731_s26 = sshll.u32 %s971_s19, 3  ;;  %770 = vmatprep.subr.bf16.mxu1 %v835_v1 }
   0xf   : > { %s219_s29 = scalar_lea.vmem %s964_s0, %s731_s26  ;;  %757 = vmatpush3.bf16.msra.mxu0 %v268_v6 }
  0x10   : > { %v816_v7 = vld [vmem:[%s219_s29] sm:$0xff]   ;;  %778 = vmatprep.subr.bf16.mxu0 %v835_v1  ;;  %s732_s29 = sshll.u32 %s971_s19, 4 }
  0x11   : > { %s224_s9 = scalar_lea.vmem %s969_s5, %s732_s29 }
  0x12   : > { %759 = vmatmul.mubr.msk.bf16.vlgmr.msra.gmra.mrb[0].mxu0 %vm260_vm2, %v816_v7 }
  0x13   : > { %782 = vmatprep.mubr.msk.bf16.mxu0 %vm837_vm1, %v835_v1  ;;  %779 = vmatpush3.bf16.msra.mxu0 %v818_v9 }
  0x14   : > { %780 = vmatprep.subr.bf16.mxu0 %v835_v1 }
  0x17   : > { %781 = vmatpush3.bf16.msra.mxu0 %v820_v11 }
  0x18   : > { %794 = vmatprep.subr.bf16.mxu0 %v835_v1 }
  0xe5   : > { %v304_v13 = vpop.f32.mrb[0].mxu0 }
  0xe6   : > { %v305_v14 = vadd.f32 %v707_v12, %v304_v13  ;;  %v760_v15 = vpop.f32.mrb[1].mxu0 }
  0xe7   : > { %v307_v16 = vpop.f32.mrb[2].mxu0 }
  0xe8   : > { %v308_v17 = vadd.f32 %v707_v12, %v307_v16  ;;  %v761_v18 = vpop.f32.mrb[3].mxu0  ;;  %v311_v19 = vmax.f32 %v305_v14, 0.0 }
  0xea   : > { %v312_v20 = vmax.f32 %v308_v17, 0.0 }
  0xec   : > { %v313_v23 = vpack.c.bf16 %v312_v20, %v311_v19 }
  0xee   : > { %767 = vmatmul.mubr.msk.bf16.vlgmr.msra.gmra.mrb[0].mxu1 %vm334_vm3, %v313_v23  ;;  %783 = vmatmul.mubr.msk.bf16.vlgmr.msra.gmra.mrb[4].mxu0 %vm334_vm3, %v313_v23 }
  0xef   : > { %771 = vmatpush3.bf16.msra.mxu1 %v821_v21  ;;  %795 = vmatpush3.bf16.msra.mxu0 %v822_v22 }
  0xf0   : > { %772 = vmatprep.subr.bf16.mxu1 %v835_v1  ;;  %796 = vmatprep.subr.bf16.mxu0 %v835_v1 }
  0xf1   : > { %774 = vmatprep.mubr.msk.bf16.mxu1 %vm837_vm1, %v835_v1  ;;  %798 = vmatprep.mubr.msk.bf16.mxu0 %vm837_vm1, %v835_v1 }
  0xf3   : > { %773 = vmatpush3.bf16.msra.mxu1 %v823_v24  ;;  %797 = vmatpush3.bf16.msra.mxu0 %v824_v25 }
  0xf4   : > { %786 = vmatprep.subr.bf16.mxu1 %v835_v1 }
  0xf6   : > { %775 = vmatmul.mubr.msk.bf16.vlgmr.msra.gmra.mrb[4].mxu1 %vm334_vm3, %v313_v23  ;;  %799 = vmatmul.mubr.msk.bf16.vlgmr.msra.gmra.mrb[8].mxu0 %vm334_vm3, %v313_v23 }
  0xf7   : > { %787 = vmatpush3.bf16.msra.mxu1 %v825_v26  ;;  %790 = vmatprep.mubr.msk.bf16.mxu1 %vm837_vm1, %v835_v1 }
  0xf8   : > { %788 = vmatprep.subr.bf16.mxu1 %v835_v1 }
  0xfb   : > { %789 = vmatpush3.bf16.msra.mxu1 %v826_v27 }
  0xfe   : > { %791 = vmatmul.mubr.msk.bf16.vlgmr.msra.gmra.mrb[8].mxu1 %vm334_vm3, %v313_v23 }
 0x1c1   : > { %v372_v30 = vpop.f32.mrb[0].mxu1  ;;  %v489_v31 = vpop.f32.mrb[4].mxu0 }
 0x1c2   : > { %v768_v32 = vpop.f32.mrb[1].mxu1  ;;  %v784_v33 = vpop.f32.mrb[5].mxu0  ;;  %v379_v36 = vrot.slane %v372_v30, 1  ;;  %v496_v37 = vrot.slane %v489_v31, 2 }
 0x1c3   : > { %v375_v34 = vpop.f32.mrb[2].mxu1  ;;  %v492_v35 = vpop.f32.mrb[6].mxu0 }
 0x1c4   : > { %v380_v38 = vrot.slane %v375_v34, 1  ;;  %v497_v39 = vrot.slane %v492_v35, 2  ;;  %v769_v40 = vpop.f32.mrb[3].mxu1  ;;  %v785_v41 = vpop.f32.mrb[7].mxu0 }
 0x1c6   : > { %v384_v42 = vsel %vm383_vm4, %v379_v36, %v380_v38  ;;  %v499_v43 = vsel %vm498_vm5, %v496_v37, %v497_v39  ;;  %v385_v44 = vsel %vm383_vm4, %v380_v38, %v379_v36  ;;  %v500_v45 = vsel %vm498_vm5, %v497_v39, %v496_v37 }
 0x1c9   : > { %v432_v46 = vpop.f32.mrb[4].mxu1  ;;  %v617_v47 = vpop.f32.mrb[8].mxu0 }
 0x1ca   : > { %v433_v48 = vadd.f32 %v432_v46, %v384_v42  ;;  %v776_v49 = vpop.f32.mrb[5].mxu1  ;;  %v800_v50 = vpop.f32.mrb[9].mxu0  ;;  %v624_v54 = vrot.slane %v617_v47, 4 }
 0x1cb   : > { %v435_v51 = vpop.f32.mrb[6].mxu1  ;;  %v620_v52 = vpop.f32.mrb[10].mxu0 }
 0x1cc   : > { %v501_v53 = vadd.f32 %v499_v43, %v433_v48  ;;  %v436_v55 = vadd.f32 %v435_v51, %v385_v44  ;;  %v625_v56 = vrot.slane %v620_v52, 4  ;;  %v777_v57 = vpop.f32.mrb[7].mxu1  ;;  %v801_v58 = vpop.f32.mrb[11].mxu0 }
 0x1ce   : > { %v502_v59 = vadd.f32 %v500_v45, %v436_v55  ;;  %v627_v60 = vsel %vm626_vm6, %v624_v54, %v625_v56  ;;  %v628_v61 = vsel %vm626_vm6, %v625_v56, %v624_v54 }
 0x1d1   : > { %v553_v62 = vpop.f32.mrb[8].mxu1 }
 0x1d2   : > { %v792_v63 = vpop.f32.mrb[9].mxu1  ;;  %v560_v1 = vrot.slane %v553_v62, 3 }
 0x1d3   : > { %v556_v0 = vpop.f32.mrb[10].mxu1 }
 0x1d4   : > { %v561_v2 = vrot.slane %v556_v0, 3  ;;  %v793_v3 = vpop.f32.mrb[11].mxu1 }
 0x1d6   : > { %v563_v4 = vsel %vm562_vm7, %v560_v1, %v561_v2  ;;  %v564_v5 = vsel %vm562_vm7, %v561_v2, %v560_v1 }
 0x1d7   : > { %v565_v6 = vadd.f32 %v563_v4, %v501_v53  ;;  %v566_v7 = vadd.f32 %v564_v5, %v502_v59 }
 0x1d9   : > { %v629_v9 = vadd.f32 %v627_v60, %v565_v6  ;;  %v630_v10 = vadd.f32 %v628_v61, %v566_v7 }
 0x1db   : > { %v638_v11 = vadd.f32 %v728_v8, %v629_v9  ;;  %v639_v12 = vadd.f32 %v728_v8, %v630_v10 }
 0x1dd   : > { %641 = vst.msk [vmem:[%s224_s9] sm:$0xff] %vm640_vm8, %v638_v11  ;;  %642 = vst.msk [vmem:[%s224_s9 + $0x8] sm:$0xff] %vm640_vm8, %v639_v12 }
 0x1de PF: > { %s15_s18 = sadd.s32 1, %s833_s18  }
 0x1df   : > { %p12_p4 = scmp.ge.s32.totalorder %s15_s18, 4  }
 0x1e1   :  { %14 = sbr.rel (!%p12_p4) target bundleno = 1 (0x1), region = 70 }

</bundles_post_ra>
